<compile_context>
chip_gen: v6e
topology: v6e:2x2x1
jax: 0.10.0
libtpu: 0.0.40
codegen_flags: <defaults>
</compile_context>

<pallas_src>
import functools

import jax
import jax.numpy as jnp
import numpy as np
from jax.experimental import pallas as pl
from jax.experimental.pallas import tpu as pltpu


def _attention_kernel(x_ref, wqkv_ref, wout_ref, bout_ref, o_ref, *,
                      heads, dim_head, bt, n, hp):
    """One grid step = Bt batch rows (Bt*N sequence positions), all in VMEM.

    x_ref    : (Bt*N, dim)            bf16
    wqkv_ref : (dim, 3*heads*HP)      bf16  (scale folded into q columns,
                                             each head's section 128-lane aligned)
    wout_ref : (heads*HP, dim_pad)    bf16  (rows aligned to the padded head layout)
    bout_ref : (1, dim_pad)           f32
    o_ref    : (Bt*N, dim_pad)        f32
    """
    # Fused QKV projection for all Bt*N rows at once: full-height MXU matmul,
    # bf16 operands, f32 accumulation.
    qkv = jnp.dot(x_ref[...], wqkv_ref[...],
                  preferred_element_type=jnp.float32)        # (Bt*N, 3*heads*HP) f32

    # Per-(batch, head) 8x8 attention core.  All slices below are 8-sublane /
    # 128-lane tile-aligned extractions (no intra-tile lane rotates).
    row_blocks = []
    for b in range(bt):
        r0 = b * n
        head_outs = []
        for h in range(heads):
            q = qkv[r0:r0 + n, h * hp:(h + 1) * hp]                       # (N, HP)
            k = qkv[r0:r0 + n, (heads + h) * hp:(heads + h + 1) * hp]     # (N, HP)
            v = qkv[r0:r0 + n, (2 * heads + h) * hp:(2 * heads + h + 1) * hp]

            # q @ k^T (scale already folded into q's weights).  The zero pad
            # columns (d >= dim_head) contribute exactly 0 to the contraction.
            dots = jax.lax.dot_general(
                q.astype(jnp.bfloat16), k.astype(jnp.bfloat16),
                (((1,), (1,)), ((), ())),
                preferred_element_type=jnp.float32)                       # (N, N) f32

            # Numerically stable softmax in f32 (EUP exp + approx reciprocal).
            m = jnp.max(dots, axis=-1, keepdims=True)
            p = jnp.exp(dots - m)
            attn = p * pl.reciprocal(jnp.sum(p, axis=-1, keepdims=True), approx=True)

            head_outs.append(jnp.dot(attn.astype(jnp.bfloat16),
                                     v.astype(jnp.bfloat16),
                                     preferred_element_type=jnp.float32))  # (N, HP)
        # Merge heads in registers (lane concat of lane-aligned tiles).
        row_blocks.append(jnp.concatenate(head_outs, axis=-1))            # (N, heads*HP)

    merged = jnp.concatenate(row_blocks, axis=0)                          # (Bt*N, heads*HP)

    # Output projection into lane-dense (128-padded) columns, plus bias.
    y = jnp.dot(merged.astype(jnp.bfloat16), wout_ref[...],
                preferred_element_type=jnp.float32) + bout_ref[...]
    # TODO(synk): nn.Dropout(p=0.5) in to_out is identity at inference;
    # training-mode dropout (RNG masking) is not implemented here.
    o_ref[...] = y.astype(o_ref.dtype)


def attention_forward(x, params, heads, dim_head, *, target_rows=256):
    """x: [B, N, dim] f32. params = (w_qkv [dim,3*inner], w_out [inner,dim], b_out [dim])."""
    B, N, dim = x.shape
    inner = heads * dim_head
    scale = float(dim_head) ** -0.5
    w_qkv, w_out, b_out = params

    # Per-head lane padding (each head's q/k/v section starts on a 128-lane
    # boundary) and lane-dense output padding.
    HP = ((dim_head + 127) // 128) * 128
    dim_pad = ((dim + 127) // 128) * 128

    # ---- weight repacking (one-time glue) ----
    w_q, w_k, w_v = jnp.split(w_qkv, 3, axis=-1)                 # each (dim, inner)

    def pad_heads(w, s=1.0):
        wr = (w * s).reshape(dim, heads, dim_head).astype(jnp.bfloat16)
        wp = jnp.zeros((dim, heads, HP), jnp.bfloat16).at[:, :, :dim_head].set(wr)
        return wp.reshape(dim, heads * HP)

    # Softmax scale folded into the q columns.
    w_qkv_p = jnp.concatenate(
        [pad_heads(w_q, scale), pad_heads(w_k), pad_heads(w_v)], axis=-1)  # (dim, 3*heads*HP)

    w_out_p = jnp.zeros((heads, HP, dim_pad), jnp.bfloat16)
    w_out_p = w_out_p.at[:, :dim_head, :dim].set(
        w_out.reshape(heads, dim_head, dim).astype(jnp.bfloat16))
    w_out_p = w_out_p.reshape(heads * HP, dim_pad)                         # (heads*HP, dim_pad)

    b_out_p = jnp.zeros((1, dim_pad), jnp.float32)
    b_out_p = b_out_p.at[:, :dim].set(b_out.reshape(1, -1).astype(jnp.float32))

    # x goes to the kernel flattened to (B*N, dim) and already in bf16.
    x_flat = x.reshape(B * N, dim).astype(jnp.bfloat16)

    # Batch rows per grid step: aim for >=256 MXU rows per step (v6e/v7x),
    # collapsing the whole batch when it is small (v5e/v6e: grid is a serial
    # loop, each extra step is pure overhead).  bt must divide B.
    bt = max(1, min(B, max(1, target_rows // N)))
    while B % bt != 0:
        bt -= 1
    steps = B // bt

    kernel = functools.partial(_attention_kernel, heads=heads, dim_head=dim_head,
                               bt=bt, n=N, hp=HP)

    flops_per_step = (2 * (bt * N) * dim * (3 * heads * HP)          # qkv projection
                      + bt * heads * (2 * 2 * N * N * HP)            # q@k^T and attn@v
                      + 2 * (bt * N) * (heads * HP) * dim_pad)       # output projection
    bytes_accessed = (x_flat.size * 2 + w_qkv_p.size * 2 + w_out_p.size * 2
                      + b_out_p.size * 4 + B * N * dim_pad * 4)
    cost = pl.CostEstimate(flops=int(steps * flops_per_step),
                           transcendentals=int(B * heads * N * N),
                           bytes_accessed=int(bytes_accessed))

    out_flat = pl.pallas_call(
        kernel,
        out_shape=jax.ShapeDtypeStruct((B * N, dim_pad), jnp.float32),
        grid_spec=pltpu.PrefetchScalarGridSpec(
            num_scalar_prefetch=0,
            grid=(steps,),
            in_specs=[
                pl.BlockSpec((bt * N, dim), lambda i: (i, 0)),            # x rows per step
                pl.BlockSpec((dim, 3 * heads * HP), lambda i: (0, 0)),    # w_qkv: resident
                pl.BlockSpec((heads * HP, dim_pad), lambda i: (0, 0)),    # w_out: resident
                pl.BlockSpec((1, dim_pad), lambda i: (0, 0)),             # b_out: resident
            ],
            out_specs=pl.BlockSpec((bt * N, dim_pad), lambda i: (i, 0)),
        ),
        compiler_params=pltpu.CompilerParams(
            dimension_semantics=("parallel",)),   # v7x: shards batch blocks over 2 TCs
        cost_estimate=cost,
    )(x_flat, w_qkv_p, w_out_p, b_out_p)

    # Strip the lane padding and restore [B, N, dim] in glue.
    return out_flat[:, :dim].reshape(B, N, dim)


def attention_reference(x, params, heads, dim_head):
    """Plain-JAX f32 reference matching the PyTorch module (eval mode)."""
    w_qkv, w_out, b_out = params
    B, N, dim = x.shape
    scale = float(dim_head) ** -0.5

    qkv = jnp.einsum("bnd,df->bnf", x, w_qkv)
    q, k, v = jnp.split(qkv, 3, axis=-1)

    def split_heads(t):
        return t.reshape(B, N, heads, dim_head).transpose(0, 2, 1, 3)

    q, k, v = map(split_heads, (q, k, v))
    dots = jnp.einsum("bhid,bhjd->bhij", q, k) * scale
    attn = jax.nn.softmax(dots, axis=-1)
    out = jnp.einsum("bhij,bhjd->bhid", attn, v)
    out = out.transpose(0, 2, 1, 3).reshape(B, N, heads * dim_head)
    return out @ w_out + b_out


def init_params(dim, heads, dim_head, seed=0):
    """nn.Linear-style uniform init (to_qkv bias-free, to_out with bias)."""
    inner = heads * dim_head
    key = jax.random.PRNGKey(seed)
    kq, ko, kb = jax.random.split(key, 3)
    bound_qkv = 1.0 / np.sqrt(dim)
    w_qkv = jax.random.uniform(kq, (dim, 3 * inner), jnp.float32, -bound_qkv, bound_qkv)
    bound_out = 1.0 / np.sqrt(inner)
    w_out = jax.random.uniform(ko, (inner, dim), jnp.float32, -bound_out, bound_out)
    b_out = jax.random.uniform(kb, (dim,), jnp.float32, -bound_out, bound_out)
    return (w_qkv, w_out, b_out)


if __name__ == "__main__":
    # Small shapes consistent with the module: batch=2, seq=8, dim=32, 4 heads of 8.
    B, N, dim = 2, 8, 32
    heads, dim_head = 4, 8

    key = jax.random.PRNGKey(0)
    x = jax.random.normal(key, (B, N, dim), jnp.float32)
    params = init_params(dim, heads, dim_head, seed=0)

    out = attention_forward(x, params, heads, dim_head)
    out = jax.block_until_ready(out)

    ref = attention_reference(x, params, heads, dim_head)
    # Deliberate numerics contract: bf16 MXU operands (f32 accumulation) +
    # approx reciprocal in softmax -> loosened tolerance vs the f32 reference.
    np.testing.assert_allclose(np.asarray(out), np.asarray(ref), rtol=2e-2, atol=2e-2)

    print("KERNEL_OK")
</pallas_src>

<mosaic_0001>
module attributes {stable_mosaic.version = 11 : i64} {
  func.func @_attention_kernel(%arg0: i32, %arg1: memref<16x32xbf16, #tpu.memory_space<vmem>>, %arg2: memref<32x1536xbf16, #tpu.memory_space<vmem>>, %arg3: memref<512x128xbf16, #tpu.memory_space<vmem>>, %arg4: memref<1x128xf32, #tpu.memory_space<vmem>>, %arg5: memref<16x128xf32, #tpu.memory_space<vmem>>) attributes {dimension_semantics = [#tpu.dimension_semantics<parallel>], iteration_bounds = array<i64: 1>, scalar_prefetch = 0 : i64, scratch_operands = 0 : i64, tpu.core_type = #tpu.core_type<tc>, window_params = [{transform_indices = @transform_0, window_bounds = array<i64: 16, 32>}, {pipeline_mode = #tpu.pipeline_mode<synchronous>, transform_indices = @transform_1, window_bounds = array<i64: 32, 1536>}, {pipeline_mode = #tpu.pipeline_mode<synchronous>, transform_indices = @transform_2, window_bounds = array<i64: 512, 128>}, {pipeline_mode = #tpu.pipeline_mode<synchronous>, transform_indices = @transform_3, window_bounds = array<i64: 1, 128>}, {transform_indices = @transform_4, window_bounds = array<i64: 16, 128>}]} {
    %c0 = arith.constant 0 : index
    %c0_0 = arith.constant 0 : index
    %0 = vector.load %arg1[%c0, %c0_0] : memref<16x32xbf16, #tpu.memory_space<vmem>>, vector<16x32xbf16>
    %c0_1 = arith.constant 0 : index
    %c0_2 = arith.constant 0 : index
    %1 = vector.load %arg2[%c0_1, %c0_2] : memref<32x1536xbf16, #tpu.memory_space<vmem>>, vector<32x1536xbf16>
    %cst = arith.constant dense<0.000000e+00> : vector<16x1536xf32>
    %2 = tpu.matmul %0, %1, %cst {dimension_numbers = #tpu.dot_dimension_numbers<[1], [0], [0], [1], [0, 0, 1, 1], [], []>} : vector<16x32xbf16>, vector<32x1536xbf16>, vector<16x1536xf32> -> vector<16x1536xf32>
    %3 = vector.extract_strided_slice %2 {offsets = [0, 0], sizes = [8, 128], strides = [1, 1]} : vector<16x1536xf32> to vector<8x128xf32>
    %4 = vector.extract_strided_slice %2 {offsets = [0, 512], sizes = [8, 128], strides = [1, 1]} : vector<16x1536xf32> to vector<8x128xf32>
    %5 = vector.extract_strided_slice %2 {offsets = [0, 1024], sizes = [8, 128], strides = [1, 1]} : vector<16x1536xf32> to vector<8x128xf32>
    %6 = arith.truncf %3 : vector<8x128xf32> to vector<8x128xbf16>
    %7 = arith.truncf %4 : vector<8x128xf32> to vector<8x128xbf16>
    %cst_3 = arith.constant dense<0.000000e+00> : vector<8x8xf32>
    %8 = tpu.matmul %6, %7, %cst_3 {dimension_numbers = #tpu.dot_dimension_numbers<[1], [1], [0], [0], [0, 0, 1, 0], [], []>} : vector<8x128xbf16>, vector<8x128xbf16>, vector<8x8xf32> -> vector<8x8xf32>
    %cst_4 = arith.constant dense<0xFF800000> : vector<8xf32>
    %9 = vector.multi_reduction <maximumf>, %8, %cst_4 [1] : vector<8x8xf32> to vector<8xf32>
    %10 = vector.shape_cast %9 : vector<8xf32> to vector<8x1xf32>
    %11 = vector.broadcast %10 : vector<8x1xf32> to vector<8x8xf32>
    %12 = arith.subf %8, %11 : vector<8x8xf32>
    %13 = math.exp %12 : vector<8x8xf32>
    %cst_5 = arith.constant dense<0.000000e+00> : vector<8xf32>
    %14 = vector.multi_reduction <add>, %13, %cst_5 [1] : vector<8x8xf32> to vector<8xf32>
    %15 = vector.shape_cast %14 : vector<8xf32> to vector<8x1xf32>
    %16 = tpu.reciprocal %15 {approx = true} : vector<8x1xf32> -> vector<8x1xf32>
    %17 = vector.broadcast %16 : vector<8x1xf32> to vector<8x8xf32>
    %18 = arith.mulf %13, %17 : vector<8x8xf32>
    %19 = arith.truncf %18 : vector<8x8xf32> to vector<8x8xbf16>
    %20 = arith.truncf %5 : vector<8x128xf32> to vector<8x128xbf16>
    %cst_6 = arith.constant dense<0.000000e+00> : vector<8x128xf32>
    %21 = tpu.matmul %19, %20, %cst_6 {dimension_numbers = #tpu.dot_dimension_numbers<[1], [0], [0], [1], [0, 0, 1, 1], [], []>} : vector<8x8xbf16>, vector<8x128xbf16>, vector<8x128xf32> -> vector<8x128xf32>
    %22 = vector.extract_strided_slice %2 {offsets = [0, 128], sizes = [8, 128], strides = [1, 1]} : vector<16x1536xf32> to vector<8x128xf32>
    %23 = vector.extract_strided_slice %2 {offsets = [0, 640], sizes = [8, 128], strides = [1, 1]} : vector<16x1536xf32> to vector<8x128xf32>
    %24 = vector.extract_strided_slice %2 {offsets = [0, 1152], sizes = [8, 128], strides = [1, 1]} : vector<16x1536xf32> to vector<8x128xf32>
    %25 = arith.truncf %22 : vector<8x128xf32> to vector<8x128xbf16>
    %26 = arith.truncf %23 : vector<8x128xf32> to vector<8x128xbf16>
    %cst_7 = arith.constant dense<0.000000e+00> : vector<8x8xf32>
    %27 = tpu.matmul %25, %26, %cst_7 {dimension_numbers = #tpu.dot_dimension_numbers<[1], [1], [0], [0], [0, 0, 1, 0], [], []>} : vector<8x128xbf16>, vector<8x128xbf16>, vector<8x8xf32> -> vector<8x8xf32>
    %cst_8 = arith.constant dense<0xFF800000> : vector<8xf32>
    %28 = vector.multi_reduction <maximumf>, %27, %cst_8 [1] : vector<8x8xf32> to vector<8xf32>
    %29 = vector.shape_cast %28 : vector<8xf32> to vector<8x1xf32>
    %30 = vector.broadcast %29 : vector<8x1xf32> to vector<8x8xf32>
    %31 = arith.subf %27, %30 : vector<8x8xf32>
    %32 = math.exp %31 : vector<8x8xf32>
    %cst_9 = arith.constant dense<0.000000e+00> : vector<8xf32>
    %33 = vector.multi_reduction <add>, %32, %cst_9 [1] : vector<8x8xf32> to vector<8xf32>
    %34 = vector.shape_cast %33 : vector<8xf32> to vector<8x1xf32>
    %35 = tpu.reciprocal %34 {approx = true} : vector<8x1xf32> -> vector<8x1xf32>
    %36 = vector.broadcast %35 : vector<8x1xf32> to vector<8x8xf32>
    %37 = arith.mulf %32, %36 : vector<8x8xf32>
    %38 = arith.truncf %37 : vector<8x8xf32> to vector<8x8xbf16>
    %39 = arith.truncf %24 : vector<8x128xf32> to vector<8x128xbf16>
    %cst_10 = arith.constant dense<0.000000e+00> : vector<8x128xf32>
    %40 = tpu.matmul %38, %39, %cst_10 {dimension_numbers = #tpu.dot_dimension_numbers<[1], [0], [0], [1], [0, 0, 1, 1], [], []>} : vector<8x8xbf16>, vector<8x128xbf16>, vector<8x128xf32> -> vector<8x128xf32>
    %41 = vector.extract_strided_slice %2 {offsets = [0, 256], sizes = [8, 128], strides = [1, 1]} : vector<16x1536xf32> to vector<8x128xf32>
    %42 = vector.extract_strided_slice %2 {offsets = [0, 768], sizes = [8, 128], strides = [1, 1]} : vector<16x1536xf32> to vector<8x128xf32>
    %43 = vector.extract_strided_slice %2 {offsets = [0, 1280], sizes = [8, 128], strides = [1, 1]} : vector<16x1536xf32> to vector<8x128xf32>
    %44 = arith.truncf %41 : vector<8x128xf32> to vector<8x128xbf16>
    %45 = arith.truncf %42 : vector<8x128xf32> to vector<8x128xbf16>
    %cst_11 = arith.constant dense<0.000000e+00> : vector<8x8xf32>
    %46 = tpu.matmul %44, %45, %cst_11 {dimension_numbers = #tpu.dot_dimension_numbers<[1], [1], [0], [0], [0, 0, 1, 0], [], []>} : vector<8x128xbf16>, vector<8x128xbf16>, vector<8x8xf32> -> vector<8x8xf32>
    %cst_12 = arith.constant dense<0xFF800000> : vector<8xf32>
    %47 = vector.multi_reduction <maximumf>, %46, %cst_12 [1] : vector<8x8xf32> to vector<8xf32>
    %48 = vector.shape_cast %47 : vector<8xf32> to vector<8x1xf32>
    %49 = vector.broadcast %48 : vector<8x1xf32> to vector<8x8xf32>
    %50 = arith.subf %46, %49 : vector<8x8xf32>
    %51 = math.exp %50 : vector<8x8xf32>
    %cst_13 = arith.constant dense<0.000000e+00> : vector<8xf32>
    %52 = vector.multi_reduction <add>, %51, %cst_13 [1] : vector<8x8xf32> to vector<8xf32>
    %53 = vector.shape_cast %52 : vector<8xf32> to vector<8x1xf32>
    %54 = tpu.reciprocal %53 {approx = true} : vector<8x1xf32> -> vector<8x1xf32>
    %55 = vector.broadcast %54 : vector<8x1xf32> to vector<8x8xf32>
    %56 = arith.mulf %51, %55 : vector<8x8xf32>
    %57 = arith.truncf %56 : vector<8x8xf32> to vector<8x8xbf16>
    %58 = arith.truncf %43 : vector<8x128xf32> to vector<8x128xbf16>
    %cst_14 = arith.constant dense<0.000000e+00> : vector<8x128xf32>
    %59 = tpu.matmul %57, %58, %cst_14 {dimension_numbers = #tpu.dot_dimension_numbers<[1], [0], [0], [1], [0, 0, 1, 1], [], []>} : vector<8x8xbf16>, vector<8x128xbf16>, vector<8x128xf32> -> vector<8x128xf32>
    %60 = vector.extract_strided_slice %2 {offsets = [0, 384], sizes = [8, 128], strides = [1, 1]} : vector<16x1536xf32> to vector<8x128xf32>
    %61 = vector.extract_strided_slice %2 {offsets = [0, 896], sizes = [8, 128], strides = [1, 1]} : vector<16x1536xf32> to vector<8x128xf32>
    %62 = vector.extract_strided_slice %2 {offsets = [0, 1408], sizes = [8, 128], strides = [1, 1]} : vector<16x1536xf32> to vector<8x128xf32>
    %63 = arith.truncf %60 : vector<8x128xf32> to vector<8x128xbf16>
    %64 = arith.truncf %61 : vector<8x128xf32> to vector<8x128xbf16>
    %cst_15 = arith.constant dense<0.000000e+00> : vector<8x8xf32>
    %65 = tpu.matmul %63, %64, %cst_15 {dimension_numbers = #tpu.dot_dimension_numbers<[1], [1], [0], [0], [0, 0, 1, 0], [], []>} : vector<8x128xbf16>, vector<8x128xbf16>, vector<8x8xf32> -> vector<8x8xf32>
    %cst_16 = arith.constant dense<0xFF800000> : vector<8xf32>
    %66 = vector.multi_reduction <maximumf>, %65, %cst_16 [1] : vector<8x8xf32> to vector<8xf32>
    %67 = vector.shape_cast %66 : vector<8xf32> to vector<8x1xf32>
    %68 = vector.broadcast %67 : vector<8x1xf32> to vector<8x8xf32>
    %69 = arith.subf %65, %68 : vector<8x8xf32>
    %70 = math.exp %69 : vector<8x8xf32>
    %cst_17 = arith.constant dense<0.000000e+00> : vector<8xf32>
    %71 = vector.multi_reduction <add>, %70, %cst_17 [1] : vector<8x8xf32> to vector<8xf32>
    %72 = vector.shape_cast %71 : vector<8xf32> to vector<8x1xf32>
    %73 = tpu.reciprocal %72 {approx = true} : vector<8x1xf32> -> vector<8x1xf32>
    %74 = vector.broadcast %73 : vector<8x1xf32> to vector<8x8xf32>
    %75 = arith.mulf %70, %74 : vector<8x8xf32>
    %76 = arith.truncf %75 : vector<8x8xf32> to vector<8x8xbf16>
    %77 = arith.truncf %62 : vector<8x128xf32> to vector<8x128xbf16>
    %cst_18 = arith.constant dense<0.000000e+00> : vector<8x128xf32>
    %78 = tpu.matmul %76, %77, %cst_18 {dimension_numbers = #tpu.dot_dimension_numbers<[1], [0], [0], [1], [0, 0, 1, 1], [], []>} : vector<8x8xbf16>, vector<8x128xbf16>, vector<8x128xf32> -> vector<8x128xf32>
    %79 = tpu.concatenate %21, %40, %59, %78 in 1 : vector<8x128xf32>, vector<8x128xf32>, vector<8x128xf32>, vector<8x128xf32> -> vector<8x512xf32>
    %80 = vector.extract_strided_slice %2 {offsets = [8, 0], sizes = [8, 128], strides = [1, 1]} : vector<16x1536xf32> to vector<8x128xf32>
    %81 = vector.extract_strided_slice %2 {offsets = [8, 512], sizes = [8, 128], strides = [1, 1]} : vector<16x1536xf32> to vector<8x128xf32>
    %82 = vector.extract_strided_slice %2 {offsets = [8, 1024], sizes = [8, 128], strides = [1, 1]} : vector<16x1536xf32> to vector<8x128xf32>
    %83 = arith.truncf %80 : vector<8x128xf32> to vector<8x128xbf16>
    %84 = arith.truncf %81 : vector<8x128xf32> to vector<8x128xbf16>
    %cst_19 = arith.constant dense<0.000000e+00> : vector<8x8xf32>
    %85 = tpu.matmul %83, %84, %cst_19 {dimension_numbers = #tpu.dot_dimension_numbers<[1], [1], [0], [0], [0, 0, 1, 0], [], []>} : vector<8x128xbf16>, vector<8x128xbf16>, vector<8x8xf32> -> vector<8x8xf32>
    %cst_20 = arith.constant dense<0xFF800000> : vector<8xf32>
    %86 = vector.multi_reduction <maximumf>, %85, %cst_20 [1] : vector<8x8xf32> to vector<8xf32>
    %87 = vector.shape_cast %86 : vector<8xf32> to vector<8x1xf32>
    %88 = vector.broadcast %87 : vector<8x1xf32> to vector<8x8xf32>
    %89 = arith.subf %85, %88 : vector<8x8xf32>
    %90 = math.exp %89 : vector<8x8xf32>
    %cst_21 = arith.constant dense<0.000000e+00> : vector<8xf32>
    %91 = vector.multi_reduction <add>, %90, %cst_21 [1] : vector<8x8xf32> to vector<8xf32>
    %92 = vector.shape_cast %91 : vector<8xf32> to vector<8x1xf32>
    %93 = tpu.reciprocal %92 {approx = true} : vector<8x1xf32> -> vector<8x1xf32>
    %94 = vector.broadcast %93 : vector<8x1xf32> to vector<8x8xf32>
    %95 = arith.mulf %90, %94 : vector<8x8xf32>
    %96 = arith.truncf %95 : vector<8x8xf32> to vector<8x8xbf16>
    %97 = arith.truncf %82 : vector<8x128xf32> to vector<8x128xbf16>
    %cst_22 = arith.constant dense<0.000000e+00> : vector<8x128xf32>
    %98 = tpu.matmul %96, %97, %cst_22 {dimension_numbers = #tpu.dot_dimension_numbers<[1], [0], [0], [1], [0, 0, 1, 1], [], []>} : vector<8x8xbf16>, vector<8x128xbf16>, vector<8x128xf32> -> vector<8x128xf32>
    %99 = vector.extract_strided_slice %2 {offsets = [8, 128], sizes = [8, 128], strides = [1, 1]} : vector<16x1536xf32> to vector<8x128xf32>
    %100 = vector.extract_strided_slice %2 {offsets = [8, 640], sizes = [8, 128], strides = [1, 1]} : vector<16x1536xf32> to vector<8x128xf32>
    %101 = vector.extract_strided_slice %2 {offsets = [8, 1152], sizes = [8, 128], strides = [1, 1]} : vector<16x1536xf32> to vector<8x128xf32>
    %102 = arith.truncf %99 : vector<8x128xf32> to vector<8x128xbf16>
    %103 = arith.truncf %100 : vector<8x128xf32> to vector<8x128xbf16>
    %cst_23 = arith.constant dense<0.000000e+00> : vector<8x8xf32>
    %104 = tpu.matmul %102, %103, %cst_23 {dimension_numbers = #tpu.dot_dimension_numbers<[1], [1], [0], [0], [0, 0, 1, 0], [], []>} : vector<8x128xbf16>, vector<8x128xbf16>, vector<8x8xf32> -> vector<8x8xf32>
    %cst_24 = arith.constant dense<0xFF800000> : vector<8xf32>
    %105 = vector.multi_reduction <maximumf>, %104, %cst_24 [1] : vector<8x8xf32> to vector<8xf32>
    %106 = vector.shape_cast %105 : vector<8xf32> to vector<8x1xf32>
    %107 = vector.broadcast %106 : vector<8x1xf32> to vector<8x8xf32>
    %108 = arith.subf %104, %107 : vector<8x8xf32>
    %109 = math.exp %108 : vector<8x8xf32>
    %cst_25 = arith.constant dense<0.000000e+00> : vector<8xf32>
    %110 = vector.multi_reduction <add>, %109, %cst_25 [1] : vector<8x8xf32> to vector<8xf32>
    %111 = vector.shape_cast %110 : vector<8xf32> to vector<8x1xf32>
    %112 = tpu.reciprocal %111 {approx = true} : vector<8x1xf32> -> vector<8x1xf32>
    %113 = vector.broadcast %112 : vector<8x1xf32> to vector<8x8xf32>
    %114 = arith.mulf %109, %113 : vector<8x8xf32>
    %115 = arith.truncf %114 : vector<8x8xf32> to vector<8x8xbf16>
    %116 = arith.truncf %101 : vector<8x128xf32> to vector<8x128xbf16>
    %cst_26 = arith.constant dense<0.000000e+00> : vector<8x128xf32>
    %117 = tpu.matmul %115, %116, %cst_26 {dimension_numbers = #tpu.dot_dimension_numbers<[1], [0], [0], [1], [0, 0, 1, 1], [], []>} : vector<8x8xbf16>, vector<8x128xbf16>, vector<8x128xf32> -> vector<8x128xf32>
    %118 = vector.extract_strided_slice %2 {offsets = [8, 256], sizes = [8, 128], strides = [1, 1]} : vector<16x1536xf32> to vector<8x128xf32>
    %119 = vector.extract_strided_slice %2 {offsets = [8, 768], sizes = [8, 128], strides = [1, 1]} : vector<16x1536xf32> to vector<8x128xf32>
    %120 = vector.extract_strided_slice %2 {offsets = [8, 1280], sizes = [8, 128], strides = [1, 1]} : vector<16x1536xf32> to vector<8x128xf32>
    %121 = arith.truncf %118 : vector<8x128xf32> to vector<8x128xbf16>
    %122 = arith.truncf %119 : vector<8x128xf32> to vector<8x128xbf16>
    %cst_27 = arith.constant dense<0.000000e+00> : vector<8x8xf32>
    %123 = tpu.matmul %121, %122, %cst_27 {dimension_numbers = #tpu.dot_dimension_numbers<[1], [1], [0], [0], [0, 0, 1, 0], [], []>} : vector<8x128xbf16>, vector<8x128xbf16>, vector<8x8xf32> -> vector<8x8xf32>
    %cst_28 = arith.constant dense<0xFF800000> : vector<8xf32>
    %124 = vector.multi_reduction <maximumf>, %123, %cst_28 [1] : vector<8x8xf32> to vector<8xf32>
    %125 = vector.shape_cast %124 : vector<8xf32> to vector<8x1xf32>
    %126 = vector.broadcast %125 : vector<8x1xf32> to vector<8x8xf32>
    %127 = arith.subf %123, %126 : vector<8x8xf32>
    %128 = math.exp %127 : vector<8x8xf32>
    %cst_29 = arith.constant dense<0.000000e+00> : vector<8xf32>
    %129 = vector.multi_reduction <add>, %128, %cst_29 [1] : vector<8x8xf32> to vector<8xf32>
    %130 = vector.shape_cast %129 : vector<8xf32> to vector<8x1xf32>
    %131 = tpu.reciprocal %130 {approx = true} : vector<8x1xf32> -> vector<8x1xf32>
    %132 = vector.broadcast %131 : vector<8x1xf32> to vector<8x8xf32>
    %133 = arith.mulf %128, %132 : vector<8x8xf32>
    %134 = arith.truncf %133 : vector<8x8xf32> to vector<8x8xbf16>
    %135 = arith.truncf %120 : vector<8x128xf32> to vector<8x128xbf16>
    %cst_30 = arith.constant dense<0.000000e+00> : vector<8x128xf32>
    %136 = tpu.matmul %134, %135, %cst_30 {dimension_numbers = #tpu.dot_dimension_numbers<[1], [0], [0], [1], [0, 0, 1, 1], [], []>} : vector<8x8xbf16>, vector<8x128xbf16>, vector<8x128xf32> -> vector<8x128xf32>
    %137 = vector.extract_strided_slice %2 {offsets = [8, 384], sizes = [8, 128], strides = [1, 1]} : vector<16x1536xf32> to vector<8x128xf32>
    %138 = vector.extract_strided_slice %2 {offsets = [8, 896], sizes = [8, 128], strides = [1, 1]} : vector<16x1536xf32> to vector<8x128xf32>
    %139 = vector.extract_strided_slice %2 {offsets = [8, 1408], sizes = [8, 128], strides = [1, 1]} : vector<16x1536xf32> to vector<8x128xf32>
    %140 = arith.truncf %137 : vector<8x128xf32> to vector<8x128xbf16>
    %141 = arith.truncf %138 : vector<8x128xf32> to vector<8x128xbf16>
    %cst_31 = arith.constant dense<0.000000e+00> : vector<8x8xf32>
    %142 = tpu.matmul %140, %141, %cst_31 {dimension_numbers = #tpu.dot_dimension_numbers<[1], [1], [0], [0], [0, 0, 1, 0], [], []>} : vector<8x128xbf16>, vector<8x128xbf16>, vector<8x8xf32> -> vector<8x8xf32>
    %cst_32 = arith.constant dense<0xFF800000> : vector<8xf32>
    %143 = vector.multi_reduction <maximumf>, %142, %cst_32 [1] : vector<8x8xf32> to vector<8xf32>
    %144 = vector.shape_cast %143 : vector<8xf32> to vector<8x1xf32>
    %145 = vector.broadcast %144 : vector<8x1xf32> to vector<8x8xf32>
    %146 = arith.subf %142, %145 : vector<8x8xf32>
    %147 = math.exp %146 : vector<8x8xf32>
    %cst_33 = arith.constant dense<0.000000e+00> : vector<8xf32>
    %148 = vector.multi_reduction <add>, %147, %cst_33 [1] : vector<8x8xf32> to vector<8xf32>
    %149 = vector.shape_cast %148 : vector<8xf32> to vector<8x1xf32>
    %150 = tpu.reciprocal %149 {approx = true} : vector<8x1xf32> -> vector<8x1xf32>
    %151 = vector.broadcast %150 : vector<8x1xf32> to vector<8x8xf32>
    %152 = arith.mulf %147, %151 : vector<8x8xf32>
    %153 = arith.truncf %152 : vector<8x8xf32> to vector<8x8xbf16>
    %154 = arith.truncf %139 : vector<8x128xf32> to vector<8x128xbf16>
    %cst_34 = arith.constant dense<0.000000e+00> : vector<8x128xf32>
    %155 = tpu.matmul %153, %154, %cst_34 {dimension_numbers = #tpu.dot_dimension_numbers<[1], [0], [0], [1], [0, 0, 1, 1], [], []>} : vector<8x8xbf16>, vector<8x128xbf16>, vector<8x128xf32> -> vector<8x128xf32>
    %156 = tpu.concatenate %98, %117, %136, %155 in 1 : vector<8x128xf32>, vector<8x128xf32>, vector<8x128xf32>, vector<8x128xf32> -> vector<8x512xf32>
    %157 = tpu.concatenate %79, %156 in 0 : vector<8x512xf32>, vector<8x512xf32> -> vector<16x512xf32>
    %158 = arith.truncf %157 : vector<16x512xf32> to vector<16x512xbf16>
    %c0_35 = arith.constant 0 : index
    %c0_36 = arith.constant 0 : index
    %159 = vector.load %arg3[%c0_35, %c0_36] : memref<512x128xbf16, #tpu.memory_space<vmem>>, vector<512x128xbf16>
    %cst_37 = arith.constant dense<0.000000e+00> : vector<16x128xf32>
    %160 = tpu.matmul %158, %159, %cst_37 {dimension_numbers = #tpu.dot_dimension_numbers<[1], [0], [0], [1], [0, 0, 1, 1], [], []>} : vector<16x512xbf16>, vector<512x128xbf16>, vector<16x128xf32> -> vector<16x128xf32>
    %c0_38 = arith.constant 0 : index
    %c0_39 = arith.constant 0 : index
    %161 = vector.load %arg4[%c0_38, %c0_39] : memref<1x128xf32, #tpu.memory_space<vmem>>, vector<1x128xf32>
    %162 = vector.broadcast %161 : vector<1x128xf32> to vector<16x128xf32>
    %163 = arith.addf %160, %162 : vector<16x128xf32>
    %c0_40 = arith.constant 0 : index
    %c0_41 = arith.constant 0 : index
    %164 = vector.load %arg5[%c0_40, %c0_41] : memref<16x128xf32, #tpu.memory_space<vmem>>, vector<16x128xf32>
    tpu.vector_store %arg5[%c0_40, %c0_41], %163 {strides = array<i32>} : memref<16x128xf32, #tpu.memory_space<vmem>>, vector<16x128xf32>,
    return
  }
  func.func @transform_0(%arg0: i32) -> (i32, i32) {
    %c0_i32 = arith.constant 0 : i32
    %c0_i32_0 = arith.constant 0 : i32
    return %arg0, %c0_i32 : i32, i32
  }
  func.func @transform_1(%arg0: i32) -> (i32, i32) {
    %c0_i32 = arith.constant 0 : i32
    %c0_i32_0 = arith.constant 0 : i32
    %c0_i32_1 = arith.constant 0 : i32
    return %c0_i32, %c0_i32_0 : i32, i32
  }
  func.func @transform_2(%arg0: i32) -> (i32, i32) {
    %c0_i32 = arith.constant 0 : i32
    %c0_i32_0 = arith.constant 0 : i32
    %c0_i32_1 = arith.constant 0 : i32
    return %c0_i32, %c0_i32_0 : i32, i32
  }
  func.func @transform_3(%arg0: i32) -> (i32, i32) {
    %c0_i32 = arith.constant 0 : i32
    %c0_i32_0 = arith.constant 0 : i32
    %c0_i32_1 = arith.constant 0 : i32
    return %c0_i32, %c0_i32_0 : i32, i32
  }
  func.func @transform_4(%arg0: i32) -> (i32, i32) {
    %c0_i32 = arith.constant 0 : i32
    %c0_i32_0 = arith.constant 0 : i32
    return %arg0, %c0_i32 : i32, i32
  }
}

</mosaic_0001>

<bundles_post_ra>
// kernel: tpu_custom_call.1
= control target key start
LH: loop header
LB: loop body
LE: loop exit
PB: predicated region body
PF: predicated region fallthrough
CT: control target
= control target key end

     0   :  { %9 = vsyncpa [#allocation3], 0  ;;  %s2267_s0 = inlined_call_operand.hbm [shape: bf16[16,32], index: 0, kind: input, shape index: {}]   ;;  %s2268_s1 = inlined_call_operand.hbm [shape: bf16[32,1536], index: 1, kind: input, shape index: {}]   ;;  %s2269_s2 = inlined_call_operand.hbm [shape: bf16[512,128], index: 2, kind: input, shape index: {}]   ;;  %s2270_s3 = inlined_call_operand.vmem [shape: f32[1,128], index: 3, kind: input, shape index: {}]   ;;  %s2271_s4 = inlined_call_operand.hbm [shape: f32[16,128], index: 4, kind: output, shape index: {}]  }
   0x1   :  { %10 = vsyncpa [#allocation6], 0 }
   0x2   :  { %11 = vsyncpa [#allocation4], 0  ;;  %s2096_s15 = smov [#allocation5]  }
   0x3   :  { %s29_s16 = sshll.u32 %s2096_s15, 4  ;;  %s30_s16 = int_to_ptr.vmem [resolvable:$true] %s29_s16 }
   0x4   :  { %s2018_s17 = scalar_lea.vmem %s30_s16, 3072  ;;  %p2023_p1 = scmp.lt.s32.totalorder %s30_s16, %s30_s16 }
   0x5   :  { %p2019_p0 = scmp.ne.s32.totalorder %s30_s16, %s2018_s17  ;;  %p2024_p2 = scmp.lt.s32.totalorder %s2018_s17, %s2018_s17 }
   0x7   :  { %p2025_p3 = por %p2024_p2, %p2023_p1 }
   0x9   :  { %p2026_p4 = pnand %p2025_p3, %p2019_p0 }
   0xb   :  { %2029 = shalt.err (!%p2026_p4)
}
   0xc   :  { %s2097_s18 = smov 768   ;;  %s2098_s19 = smov 48  }
   0xd   :  { %35 = dma.hbm_to_vmem [thread:$0]  %s2268_s1, 3072, %s30_s16, [#allocation6], %s2097_s18, %s2097_s18, %s2098_s19  }
   0xe   :  { %s2099_s22 = smov [#allocation2]  }
   0xf   :  { %s17_s23 = sshll.u32 %s2099_s22, 4  ;;  %s18_s23 = int_to_ptr.vmem [resolvable:$true] %s17_s23 }
  0x10   :  { %s2038_s24 = scalar_lea.vmem %s18_s23, 128  ;;  %p2043_p6 = scmp.lt.s32.totalorder %s18_s23, %s18_s23 }
  0x11   :  { %p2039_p5 = scmp.ne.s32.totalorder %s18_s23, %s2038_s24  ;;  %p2044_p7 = scmp.lt.s32.totalorder %s2038_s24, %s2038_s24 }
  0x13   :  { %p2045_p8 = por %p2044_p7, %p2043_p6 }
  0x15   :  { %p2046_p9 = pnand %p2045_p8, %p2039_p5 }
  0x17   :  { %2049 = shalt.err (!%p2046_p9)
}
  0x18   :  { %s2100_s25 = smov 64   ;;  %s2101_s26 = smov 4  }
  0x19   :  { %23 = dma.hbm_to_vmem [thread:$0]  %s2267_s0, 128, %s18_s23, [#allocation3], %s2100_s25, %s2100_s25, %s2101_s26  }
  0x1a   :  { %s2102_s29 = smov [#allocation7]  }
  0x1b   :  { %s41_s30 = sshll.u32 %s2102_s29, 4  ;;  %s42_s30 = int_to_ptr.vmem [resolvable:$true] %s41_s30 }
  0x1c   :  { %s2058_s1 = scalar_lea.vmem %s42_s30, 4096  ;;  %p2063_p11 = scmp.lt.s32.totalorder %s42_s30, %s42_s30 }
  0x1d   :  { %p2059_p10 = scmp.ne.s32.totalorder %s42_s30, %s2058_s1  ;;  %p2064_p12 = scmp.lt.s32.totalorder %s2058_s1, %s2058_s1 }
  0x1f   :  { %p2065_p13 = por %p2064_p12, %p2063_p11 }
  0x21   :  { %p2066_p0 = pnand %p2065_p13, %p2059_p10 }
  0x23   :  { %2069 = shalt.err (!%p2066_p0)
}
  0x24   :  { %47 = dma.hbm_to_vmem [thread:$0]  %s2269_s2, 4096, %s42_s30, [#allocation6], %s2100_s25, %s2100_s25, %s2101_s26  }
  0x25   :  { %2090 = dma.done.wait [#allocation3], 128  }
  0x26   :  { %2091 = vsyncadd [#allocation3], 4294967168 }
  0x27   :  { %2092 = dma.done.wait [#allocation6], 7168  }
  0x28   :  { %2093 = vsyncadd [#allocation6], 4294960128  ;;  %v2103_v0 = vmov 0   ;;  %v1909_v1 = vld [vmem:[#allocation5 + $0x64] ss:$48 sps:$4 sm:$0xff]   ;;  %v1915_v5 = vld [vmem:[#allocation2] sm:$0xff]  }
  0x29   :  { %247 = vmatprep.mubr.bf16.mxu0 %v2103_v0  ;;  %290 = vmatprep.mubr.bf16.mxu1 %v2103_v0  ;;  %v1911_v2 = vld [vmem:[#allocation5 + $0x60] ss:$48 sps:$4 sm:$0xff]   ;;  %v1912_v3 = vld [vmem:[#allocation5 + $0x4] ss:$48 sps:$4 sm:$0xff]   ;;  %v1919_v7 = vld [vmem:[#allocation5 + $0x6c] ss:$48 sps:$4 sm:$0xff]  }
  0x2a   :  { %227 = vmatprep.subr.bf16.mxu0 %v1909_v1  ;;  %v1914_v4 = vld [vmem:[#allocation5] ss:$48 sps:$4 sm:$0xff]   ;;  %v1918_v6 = vld [vmem:[#allocation5 + $0x74] ss:$48 sps:$4 sm:$0xff]   ;;  %v1921_v8 = vld [vmem:[#allocation5 + $0x68] ss:$48 sps:$4 sm:$0xff]   ;;  %270 = vmatprep.subr.bf16.mxu1 %v1919_v7 }
  0x2b   :  { %228 = vmatpush1.bf16.msra.mxu0 %v1911_v2  ;;  %vm211_vm0 = vcmask 261120   ;;  %v1916_v9 = vld [vmem:[#allocation5 + $0x70] ss:$48 sps:$4 sm:$0xff]   ;;  %v1924_v10 = vld [vmem:[#allocation5 + $0x14] ss:$48 sps:$4 sm:$0xff]   ;;  %271 = vmatpush1.bf16.msra.mxu1 %v1921_v8  ;;  %v2104_v22 = vmov 0.0  }
  0x2c   :  { %229 = vmatprep.subr.bf16.mxu0 %v1912_v3  ;;  %v1925_v11 = vld [vmem:[#allocation5 + $0xc] ss:$48 sps:$4 sm:$0xff]   ;;  %v1927_v12 = vld [vmem:[#allocation5 + $0x8] ss:$48 sps:$4 sm:$0xff]   ;;  %v1922_v14 = vld [vmem:[#allocation5 + $0x10] ss:$48 sps:$4 sm:$0xff]  }
  0x2d   :  { %272 = vmatprep.subr.bf16.mxu1 %v1925_v11  ;;  %v1930_v13 = vld [vmem:[#allocation5 + $0x7c] ss:$48 sps:$4 sm:$0xff]   ;;  %v1928_v15 = vld [vmem:[#allocation5 + $0x78] ss:$48 sps:$4 sm:$0xff]   ;;  %v1936_v17 = vld [vmem:[#allocation5 + $0x84] ss:$48 sps:$4 sm:$0xff]  }
  0x2e   :  { %v1933_v16 = vld [vmem:[#allocation5 + $0x1c] ss:$48 sps:$4 sm:$0xff]   ;;  %v1934_v18 = vld [vmem:[#allocation5 + $0x80] ss:$48 sps:$4 sm:$0xff]   ;;  %v1931_v19 = vld [vmem:[#allocation5 + $0x18] ss:$48 sps:$4 sm:$0xff]  }
  0x2f   :  { %230 = vmatpush1.bf16.msra.mxu0 %v1914_v4  ;;  %273 = vmatpush1.bf16.msra.mxu1 %v1927_v12  ;;  %v1939_v20 = vld [vmem:[#allocation5 + $0x24] ss:$48 sps:$4 sm:$0xff]   ;;  %v1937_v21 = vld [vmem:[#allocation5 + $0x20] ss:$48 sps:$4 sm:$0xff]   ;;  %vm2105_vm1 = vmmov 0   ;;  %vm532_vm2 = vcmask 1043456  }
  0x30   :  { %313 = vmatprep.subr.bf16.mxu0 %v1918_v6  ;;  %356 = vmatprep.subr.bf16.mxu1 %v1930_v13  ;;  %v1940_v23 = vld [vmem:[#allocation5 + $0x88] ss:$48 sps:$4 sm:$0xff]   ;;  %v1942_v24 = vld [vmem:[#allocation5 + $0x8c] ss:$48 sps:$4 sm:$0xff]   ;;  %vm515_vm3 = vcmask 64512   ;;  %s2106_s7 = smov [#allocation8]  }
  0x31   :  { %v1945_v25 = vld [vmem:[#allocation5 + $0x2c] ss:$48 sps:$4 sm:$0xff]   ;;  %v1943_v26 = vld [vmem:[#allocation5 + $0x28] ss:$48 sps:$4 sm:$0xff]   ;;  %s1639_s8 = sshll.u32 %s2106_s7, 4  ;;  %s1640_s8 = int_to_ptr.vmem [resolvable:$true] %s1639_s8 }
  0x32   :  { %1677 = vmatmul.mubr.msk.bf16.vlgmr.msra.gmra.mxu0 %vm211_vm0, %v1915_v5  ;;  %1678 = vmatmul.mubr.msk.bf16.vlgmr.msra.gmra.mxu1 %vm211_vm0, %v1915_v5  ;;  %s2070_s9 = scalar_lea.vmem %s1640_s8, 256  ;;  %p2075_p2 = scmp.lt.s32.totalorder %s1640_s8, %s1640_s8 }
  0x33   :  { %314 = vmatpush1.bf16.msra.mxu0 %v1916_v9  ;;  %333 = vmatprep.mubr.bf16.mxu0 %v2103_v0  ;;  %p2071_p1 = scmp.ne.s32.totalorder %s1640_s8, %s2070_s9  ;;  %p2076_p3 = scmp.lt.s32.totalorder %s2070_s9, %s2070_s9 }
  0x34   :  { %315 = vmatprep.subr.bf16.mxu0 %v1924_v10  ;;  %357 = vmatpush1.bf16.msra.mxu1 %v1928_v15 }
  0x35   :  { %376 = vmatprep.mubr.bf16.mxu1 %v2103_v0  ;;  %358 = vmatprep.subr.bf16.mxu1 %v1933_v16  ;;  %p2077_p4 = por %p2076_p3, %p2075_p2 }
  0x37   :  { %316 = vmatpush1.bf16.msra.mxu0 %v1922_v14  ;;  %p2078_p5 = pnand %p2077_p4, %p2071_p1 }
  0x38   :  { %399 = vmatprep.subr.bf16.mxu0 %v1936_v17  ;;  %359 = vmatpush1.bf16.msra.mxu1 %v1931_v19 }
  0x39   :  { %442 = vmatprep.subr.bf16.mxu1 %v1942_v24 }
  0x3a   :  { %1679 = vmatmul.mubr.msk.bf16.vlgmr.msra.gmra.mxu0 %vm211_vm0, %v1915_v5 }
  0x3b   :  { %400 = vmatpush1.bf16.msra.mxu0 %v1934_v18  ;;  %419 = vmatprep.mubr.bf16.mxu0 %v2103_v0 }
  0x3c   :  { %1680 = vmatmul.mubr.msk.bf16.vlgmr.msra.gmra.mxu1 %vm211_vm0, %v1915_v5  ;;  %401 = vmatprep.subr.bf16.mxu0 %v1939_v20 }
  0x3d   :  { %462 = vmatprep.mubr.bf16.mxu1 %v2103_v0  ;;  %443 = vmatpush1.bf16.msra.mxu1 %v1940_v23 }
  0x3e   :  { %444 = vmatprep.subr.bf16.mxu1 %v1945_v25 }
  0x3f   :  { %402 = vmatpush1.bf16.msra.mxu0 %v1937_v21 }
  0x40   :  { %1800 = vmatprep.subr.bf16.mxu0 %v2104_v22 }
  0x41   :  { %445 = vmatpush1.bf16.msra.mxu1 %v1943_v26 }
  0x42   :  { %1681 = vmatmul.mubr.msk.bf16.vlgmr.msra.gmra.mxu0 %vm211_vm0, %v1915_v5  ;;  %1806 = vmatprep.subr.bf16.mxu1 %v2104_v22 }
  0x43   :  { %1802 = vmatprep.mubr.msk.bf16.mxu0 %vm2105_vm1, %v2104_v22 }
  0x44   :  { %1682 = vmatmul.mubr.msk.bf16.vlgmr.msra.gmra.mxu1 %vm211_vm0, %v1915_v5 }
  0x45   :  { %1808 = vmatprep.mubr.msk.bf16.mxu1 %vm2105_vm1, %v2104_v22 }
  0xf2   :  { %v249_v27 = vpop.f32.mrf.mxu0  ;;  %v292_v31 = vpop.f32.mrf.mxu1 }
  0xf3   :  { %v473_v37 = vpack.c.bf16 %v249_v27, %v249_v27  ;;  %v677_v43 = vpack.c.bf16 %v292_v31, %v292_v31 }
  0xf4   :  { %v251_v28 = vpop.f32.mrf.mxu0  ;;  %v294_v34 = vpop.f32.mrf.mxu1 }
  0xf5   :  { %v576_v42 = vpack.c.bf16 %v251_v28, %v251_v28  ;;  %v778_v47 = vpack.c.bf16 %v294_v34, %v294_v34 }
  0xf6   :  { %v253_v29 = vpop.f32.mrf.mxu0  ;;  %v296_v36 = vpop.f32.mrf.mxu1 }
  0xf7   :  { %v879_v50 = vpack.c.bf16 %v253_v29, %v253_v29  ;;  %v1081_v56 = vpack.c.bf16 %v296_v36, %v296_v36 }
  0xf8   :  { %v255_v30 = vpop.f32.mrf.mxu0  ;;  %v298_v39 = vpop.f32.mrf.mxu1 }
  0xf9   :  { %v980_v52 = vpack.c.bf16 %v255_v30, %v255_v30  ;;  %v1182_v61 = vpack.c.bf16 %v298_v39, %v298_v39 }
  0xfa   :  { %v335_v32 = vpop.f32.mrf.mxu0 }
  0xfb   :  { %v474_v33 = vpack.c.bf16 %v335_v32, %v335_v32 }
  0xfc   :  { %v337_v35 = vpop.f32.mrf.mxu0  ;;  %v378_v40 = vpop.f32.mrf.mxu1 }
  0xfd   :  { %1801 = vmatpush3.bf16.xpose.msra.mxu0 %v474_v33  ;;  %v577_v38 = vpack.c.bf16 %v337_v35, %v337_v35  ;;  %v678_v41 = vpack.c.bf16 %v378_v40, %v378_v40 }
  0xfe   :  { %1812 = vmatprep.subr.bf16.mxu0 %v2104_v22  ;;  %v380_v44 = vpop.f32.mrf.mxu1  ;;  %v339_v46 = vpop.f32.mrf.mxu0 }
  0xff   :  { %v779_v45 = vpack.c.bf16 %v380_v44, %v380_v44  ;;  %v880_v48 = vpack.c.bf16 %v339_v46, %v339_v46 }
 0x100   :  { %v341_v49 = vpop.f32.mrf.mxu0  ;;  %v382_v53 = vpop.f32.mrf.mxu1 }
 0x101   :  { %v981_v51 = vpack.c.bf16 %v341_v49, %v341_v49  ;;  %v1082_v54 = vpack.c.bf16 %v382_v53, %v382_v53 }
 0x102   :  { %v384_v55 = vpop.f32.mrf.mxu1  ;;  %v421_v58 = vpop.f32.mrf.mxu0 }
 0x103   :  { %v1183_v57 = vpack.c.bf16 %v384_v55, %v384_v55  ;;  %v528_v59 = vpack.c.bf16 %v421_v58, %v421_v58 }
 0x104   :  { %1803 = vmatmul.mubr.bf16.vlgmr.msra.gmra.mxu0 %v473_v37  ;;  %v2178_v62 = vpop.f32.mrf.mxu0 }
 0x105   :  { %1813 = vmatpush3.bf16.xpose.msra.mxu0 %v577_v38  ;;  %1814 = vmatprep.mubr.msk.bf16.mxu0 %vm2105_vm1, %v2104_v22  ;;  %v534_v60 = vsel %vm532_vm2, %v528_v59, 0 }
 0x106   :  { %1824 = vmatprep.subr.bf16.mxu0 %v2104_v22  ;;  %1807 = vmatpush3.bf16.msra.mxu1 %v534_v60  ;;  %v2180_v63 = vpop.f32.mrf.mxu0 }
 0x107   :  { %1818 = vmatprep.subr.bf16.mxu1 %v2104_v22 }
 0x108   :  { %v2182_v0 = vpop.f32.mrf.mxu0 }
 0x10c   :  { %1815 = vmatmul.mubr.bf16.vlgmr.msra.gmra.mxu0 %v576_v42 }
 0x10d   :  { %1825 = vmatpush3.bf16.xpose.msra.mxu0 %v678_v41  ;;  %1826 = vmatprep.mubr.msk.bf16.mxu0 %vm2105_vm1, %v2104_v22 }
 0x10e   :  { %1836 = vmatprep.subr.bf16.mxu0 %v2104_v22 }
 0x114   :  { %1827 = vmatmul.mubr.bf16.vlgmr.msra.gmra.mxu0 %v677_v43 }
 0x115   :  { %1837 = vmatpush3.bf16.xpose.msra.mxu0 %v779_v45  ;;  %1838 = vmatprep.mubr.msk.bf16.mxu0 %vm2105_vm1, %v2104_v22 }
 0x116   :  { %1848 = vmatprep.subr.bf16.mxu0 %v2104_v22 }
 0x11c   :  { %1839 = vmatmul.mubr.bf16.vlgmr.msra.gmra.mxu0 %v778_v47 }
 0x11d   :  { %1849 = vmatpush3.bf16.xpose.msra.mxu0 %v880_v48  ;;  %1850 = vmatprep.mubr.msk.bf16.mxu0 %vm2105_vm1, %v2104_v22 }
 0x11e   :  { %1860 = vmatprep.subr.bf16.mxu0 %v2104_v22 }
 0x124   :  { %1851 = vmatmul.mubr.bf16.vlgmr.msra.gmra.mxu0 %v879_v50 }
 0x125   :  { %1861 = vmatpush3.bf16.xpose.msra.mxu0 %v981_v51  ;;  %1862 = vmatprep.mubr.msk.bf16.mxu0 %vm2105_vm1, %v2104_v22 }
 0x126   :  { %1872 = vmatprep.subr.bf16.mxu0 %v2104_v22 }
 0x12c   :  { %1863 = vmatmul.mubr.bf16.vlgmr.msra.gmra.mxu0 %v980_v52 }
 0x12d   :  { %1873 = vmatpush3.bf16.xpose.msra.mxu0 %v1082_v54  ;;  %1874 = vmatprep.mubr.msk.bf16.mxu0 %vm2105_vm1, %v2104_v22 }
 0x12e   :  { %1884 = vmatprep.subr.bf16.mxu0 %v2104_v22 }
 0x134   :  { %1875 = vmatmul.mubr.bf16.vlgmr.msra.gmra.mxu0 %v1081_v56 }
 0x135   :  { %1885 = vmatpush3.bf16.xpose.msra.mxu0 %v1183_v57  ;;  %1886 = vmatprep.mubr.msk.bf16.mxu0 %vm2105_vm1, %v2104_v22 }
 0x13c   :  { %1887 = vmatmul.mubr.bf16.vlgmr.msra.gmra.mxu0 %v1182_v61 }
 0x1c4   :  { %v509_v1 = vpop.f32.mrf.mxu0 }
 0x1c5   :  { %v516_v2 = vsel %vm515_vm3, %v509_v1, -inf }
 0x1c6   :  { %517 = vmax.xlane.f32.xlu0 %v516_v2  ;;  %v1804_v3 = vpop.f32.mrf.mxu0 }
 0x1c8   :  { %v512_v4 = vpop.f32.mrf.mxu0 }
 0x1ca   :  { %v1805_v5 = vpop.f32.mrf.mxu0 }
 0x1cc   :  { %v612_v6 = vpop.f32.mrf.mxu0 }
 0x1cd   :  { %v618_v7 = vsel %vm515_vm3, %v612_v6, -inf }
 0x1ce   :  { %619 = vmax.xlane.f32.xlu0 %v618_v7  ;;  %v1816_v8 = vpop.f32.mrf.mxu0 }
 0x1d0   :  { %v615_v9 = vpop.f32.mrf.mxu0 }
 0x1d2   :  { %v1817_v10 = vpop.f32.mrf.mxu0 }
 0x1d4   :  { %v713_v11 = vpop.f32.mrf.mxu0 }
 0x1d5   :  { %v719_v12 = vsel %vm515_vm3, %v713_v11, -inf }
 0x1d6   :  { %720 = vmax.xlane.f32.xlu1 %v719_v12  ;;  %v1828_v13 = vpop.f32.mrf.mxu0 }
 0x1d8   :  { %v716_v14 = vpop.f32.mrf.mxu0 }
 0x1da   :  { %v1829_v15 = vpop.f32.mrf.mxu0 }
 0x1dc   :  { %v814_v16 = vpop.f32.mrf.mxu0 }
 0x1dd   :  { %v820_v17 = vsel %vm515_vm3, %v814_v16, -inf }
 0x1de   :  { %821 = vmax.xlane.f32.xlu1 %v820_v17  ;;  %v1840_v18 = vpop.f32.mrf.mxu0 }
 0x1e0   :  { %v817_v19 = vpop.f32.mrf.mxu0 }
 0x1e2   :  { %v1841_v20 = vpop.f32.mrf.mxu0 }
 0x1e4   :  { %v915_v21 = vpop.f32.mrf.mxu0 }
 0x1e5   :  { %v921_v23 = vsel %vm515_vm3, %v915_v21, -inf }
 0x1e6   :  { %922 = vmax.xlane.f32.xlu0 %v921_v23  ;;  %v1852_v24 = vpop.f32.mrf.mxu0 }
 0x1e8   :  { %v918_v25 = vpop.f32.mrf.mxu0 }
 0x1e9   :  { %v630_v25 = vpack.c.bf16 %v2178_v62, %v2178_v62 }
 0x1ea   :  { %v1853_v26 = vpop.f32.mrf.mxu0 }
 0x1ec   :  { %v1016_v27 = vpop.f32.mrf.mxu0 }
 0x1ed   :  { %v1022_v28 = vsel %vm515_vm3, %v1016_v27, -inf }
 0x1ee   :  { %1023 = vmax.xlane.f32.xlu1 %v1022_v28  ;;  %v1864_v29 = vpop.f32.mrf.mxu0 }
 0x1ef   :  { %v635_v29 = vsel %vm532_vm2, %v630_v25, 0  ;;  %v1963_v25 = vld [vmem:[#allocation7 + $0xe8] sm:$0xff]  }
 0x1f0   :  { %v1019_v30 = vpop.f32.mrf.mxu0 }
 0x1f1   :  { %v464_v30 = vpop.f32.mrf.mxu1 }
 0x1f2   :  { %v1865_v31 = vpop.f32.mrf.mxu0 }
 0x1f3   :  { %v731_v31 = vpack.c.bf16 %v464_v30, %v464_v30  ;;  %v1968_v30 = vld [vmem:[#allocation7] sm:$0xff]  }
 0x1f4   :  { %v1117_v32 = vpop.f32.mrf.mxu0 }
 0x1f5   :  { %v1123_v33 = vsel %vm515_vm3, %v1117_v32, -inf  ;;  %v736_v62 = vsel %vm532_vm2, %v731_v31, 0  ;;  %v1969_v31 = vld [vmem:[#allocation7 + $0xa0] sm:$0xff]  }
 0x1f6   :  { %1124 = vmax.xlane.f32.xlu0 %v1123_v33  ;;  %v1876_v34 = vpop.f32.mrf.mxu0 }
 0x1f8   :  { %v1120_v35 = vpop.f32.mrf.mxu0 }
 0x1fa   :  { %v1877_v36 = vpop.f32.mrf.mxu0 }
 0x1fc   :  { %v1218_v37 = vpop.f32.mrf.mxu0 }
 0x1fd   :  { %v1224_v38 = vsel %vm515_vm3, %v1218_v37, -inf }
 0x1fe   :  { %1225 = vmax.xlane.f32.xlu1 %v1224_v38  ;;  %v1888_v39 = vpop.f32.mrf.mxu0 }
 0x200   :  { %v1221_v40 = vpop.f32.mrf.mxu0 }
 0x202   :  { %v1889_v41 = vpop.f32.mrf.mxu0 }
 0x24f   :  { %v518_v42 = vpop.xlane.xlu0 %517 }
 0x250   :  { %v519_v43 = vsub.f32 %v509_v1, %v518_v42 }
 0x252   :  { %v520_v44 = vmul.f32 1.442695, %v519_v43 }
 0x254   :  { %1978 = vpow2.f32 %v520_v44  ;;  %v933_v44 = vpack.c.bf16 %v2180_v63, %v2180_v63 }
 0x257   :  { %v620_v45 = vpop.xlane.xlu0 %619 }
 0x258   :  { %v621_v46 = vsub.f32 %v612_v6, %v620_v45 }
 0x25a   :  { %v622_v47 = vmul.f32 1.442695, %v621_v46 }
 0x25c   :  { %1980 = vpow2.f32 %v622_v47 }
 0x25f   :  { %v721_v48 = vpop.xlane.xlu1 %720 }
 0x260   :  { %v722_v49 = vsub.f32 %v713_v11, %v721_v48  ;;  %v938_v48 = vsel %vm532_vm2, %v933_v44, 0 }
 0x261   :  { %v1979_v50 = vpop.eup %1978 }
 0x262   :  { %v723_v51 = vmul.f32 1.442695, %v722_v49  ;;  %v522_v52 = vsel %vm515_vm3, %v1979_v50, 0.0 }
 0x263   :  { %523 = vadd.xlane.f32.xlu0 %v522_v52 }
 0x264   :  { %1982 = vpow2.f32 %v723_v51 }
 0x267   :  { %v822_v53 = vpop.xlane.xlu1 %821 }
 0x268   :  { %v823_v54 = vsub.f32 %v814_v16, %v822_v53 }
 0x269   :  { %v1981_v55 = vpop.eup %1980 }
 0x26a   :  { %v824_v56 = vmul.f32 1.442695, %v823_v54  ;;  %v624_v57 = vsel %vm515_vm3, %v1981_v55, 0.0 }
 0x26b   :  { %625 = vadd.xlane.f32.xlu1 %v624_v57 }
 0x26c   :  { %1984 = vpow2.f32 %v824_v56 }
 0x26f   :  { %v923_v58 = vpop.xlane.xlu0 %922 }
 0x270   :  { %v924_v59 = vsub.f32 %v915_v21, %v923_v58 }
 0x271   :  { %v1983_v60 = vpop.eup %1982 }
 0x272   :  { %v925_v61 = vmul.f32 1.442695, %v924_v59  ;;  %v725_v1 = vsel %vm515_vm3, %v1983_v60, 0.0 }
 0x273   :  { %726 = vadd.xlane.f32.xlu0 %v725_v1 }
 0x274   :  { %1986 = vpow2.f32 %v925_v61 }
 0x277   :  { %v1024_v2 = vpop.xlane.xlu1 %1023 }
 0x278   :  { %v1025_v3 = vsub.f32 %v1016_v27, %v1024_v2 }
 0x279   :  { %v2195_v4 = vpop.eup %1984 }
 0x27a   :  { %v1026_v5 = vmul.f32 1.442695, %v1025_v3  ;;  %v826_v6 = vsel %vm515_vm3, %v2195_v4, 0.0 }
 0x27b   :  { %827 = vadd.xlane.f32.xlu1 %v826_v6 }
 0x27c   :  { %1988 = vpow2.f32 %v1026_v5 }
 0x27f   :  { %v1125_v7 = vpop.xlane.xlu0 %1124 }
 0x280   :  { %v1126_v8 = vsub.f32 %v1117_v32, %v1125_v7 }
 0x281   :  { %v2199_v9 = vpop.eup %1986 }
 0x282   :  { %v1127_v10 = vmul.f32 1.442695, %v1126_v8  ;;  %v927_v11 = vsel %vm515_vm3, %v2199_v9, 0.0  ;;  %v1946_v8 = vld [vmem:[#allocation7 + $0x78] sm:$0xff]  }
 0x283   :  { %928 = vadd.xlane.f32.xlu0 %v927_v11  ;;  %1756 = vmatprep.subr.bf16.mxu0 %v1946_v8  ;;  %v1949_v11 = vld [vmem:[#allocation7 + $0x30] sm:$0xff]  }
 0x284   :  { %1990 = vpow2.f32 %v1127_v10  ;;  %v1948_v10 = vld [vmem:[#allocation7 + $0x70] sm:$0xff]  }
 0x287   :  { %v1226_v12 = vpop.xlane.xlu1 %1225 }
 0x288   :  { %v1227_v13 = vsub.f32 %v1218_v37, %v1226_v12  ;;  %v466_v37 = vpop.f32.mrf.mxu1  ;;  %v1950_v12 = vld [vmem:[#allocation7 + $0x68] sm:$0xff]  }
 0x289   :  { %v2203_v14 = vpop.eup %1988  ;;  %v832_v38 = vpack.c.bf16 %v466_v37, %v466_v37  ;;  %v1976_v37 = vld [vmem:[#allocation7 + $0xc0] sm:$0xff]  }
 0x28a   :  { %v1228_v15 = vmul.f32 1.442695, %v1227_v13  ;;  %v1028_v16 = vsel %vm515_vm3, %v2203_v14, 0.0  ;;  %v1951_v13 = vld [vmem:[#allocation7 + $0x28] sm:$0xff]  }
 0x28b   :  { %1029 = vadd.xlane.f32.xlu1 %v1028_v16  ;;  %v837_v42 = vsel %vm532_vm2, %v832_v38, 0  ;;  %v1955_v16 = vld [vmem:[#allocation7 + $0xf8] sm:$0xff]   ;;  %v1977_v38 = vld [vmem:[#allocation7 + $0x80] sm:$0xff]  }
 0x28c   :  { %1992 = vpow2.f32 %v1228_v15  ;;  %v1954_v15 = vld [vmem:[#allocation7 + $0x58] sm:$0xff]  }
 0x291   :  { %v2207_v17 = vpop.eup %1990 }
 0x292   :  { %v1129_v18 = vsel %vm515_vm3, %v2207_v17, 0.0 }
 0x293   :  { %1130 = vadd.xlane.f32.xlu0 %v1129_v18  ;;  %v1957_v18 = vld [vmem:[#allocation7 + $0xb8] sm:$0xff]  }
 0x299   :  { %v2211_v19 = vpop.eup %1992 }
 0x29a   :  { %v1230_v20 = vsel %vm515_vm3, %v2211_v19, 0.0 }
 0x29b   :  { %1231 = vadd.xlane.f32.xlu1 %v1230_v20  ;;  %v1959_v20 = vld [vmem:[#allocation7 + $0xf0] sm:$0xff]  }
 0x2ec   :  { %v524_v21 = vpop.xlane.xlu0 %523 }
 0x2ed   :  { %1994 = vrcp.f32 %v524_v21  ;;  %v1960_v21 = vld [vmem:[#allocation7 + $0x10] sm:$0xff]  }
 0x2f4   :  { %v626_v23 = vpop.xlane.xlu1 %625 }
 0x2f5   :  { %1996 = vrcp.f32 %v626_v23  ;;  %v1961_v23 = vld [vmem:[#allocation7 + $0xb0] sm:$0xff]  }
 0x2fa   :  { %v1995_v24 = vpop.eup %1994 }
 0x2fb   :  { %v526_v26 = vmul.f32 %v1995_v24, %v1979_v50  ;;  %v1034_v50 = vpack.c.bf16 %v2182_v0, %v2182_v0  ;;  %v1962_v24 = vld [vmem:[#allocation7 + $0x48] sm:$0xff]  }
 0x2fc   :  { %v727_v27 = vpop.xlane.xlu0 %726 }
 0x2fd   :  { %1998 = vrcp.f32 %v727_v27  ;;  %v527_v28 = vpack.c.bf16 %v526_v26, %v526_v26  ;;  %v1039_v53 = vsel %vm532_vm2, %v1034_v50, 0  ;;  %v1964_v26 = vld [vmem:[#allocation7 + $0x8] sm:$0xff]  }
 0x2fe   :  { %v1965_v27 = vld [vmem:[#allocation7 + $0xa8] sm:$0xff]  }
 0x2ff   :  { %1809 = vmatmul.mubr.msk.bf16.vlgmr.msra.gmra.mxu1 %vm515_vm3, %v527_v28  ;;  %v1966_v28 = vld [vmem:[#allocation7 + $0x40] sm:$0xff]  }
 0x300   :  { %1819 = vmatpush3.bf16.msra.mxu1 %v635_v29  ;;  %1820 = vmatprep.mubr.msk.bf16.mxu1 %vm2105_vm1, %v2104_v22  ;;  %v1967_v29 = vld [vmem:[#allocation7 + $0xe0] sm:$0xff]  }
 0x301   :  { %1830 = vmatprep.subr.bf16.mxu1 %v2104_v22 }
 0x302   :  { %v1997_v32 = vpop.eup %1996 }
 0x303   :  { %v628_v33 = vmul.f32 %v1997_v32, %v1981_v55  ;;  %v468_v55 = vpop.f32.mrf.mxu1  ;;  %v1970_v32 = vld [vmem:[#allocation7 + $0xd8] sm:$0xff]  }
 0x304   :  { %v828_v34 = vpop.xlane.xlu1 %827  ;;  %v1135_v56 = vpack.c.bf16 %v468_v55, %v468_v55 }
 0x305   :  { %2000 = vrcp.f32 %v828_v34  ;;  %v629_v35 = vpack.c.bf16 %v628_v33, %v628_v33  ;;  %v1971_v33 = vld [vmem:[#allocation7 + $0x98] sm:$0xff]   ;;  %v1972_v34 = vld [vmem:[#allocation7 + $0xd0] sm:$0xff]  }
 0x306   :  { %v1140_v59 = vsel %vm532_vm2, %v1135_v56, 0 }
 0x307   :  { %1821 = vmatmul.mubr.msk.bf16.vlgmr.msra.gmra.mxu1 %vm515_vm3, %v629_v35  ;;  %v1974_v35 = vld [vmem:[#allocation7 + $0xc8] sm:$0xff]  }
 0x308   :  { %1831 = vmatpush3.bf16.msra.mxu1 %v736_v62  ;;  %1832 = vmatprep.mubr.msk.bf16.mxu1 %vm2105_vm1, %v2104_v22  ;;  %v1973_v62 = vld [vmem:[#allocation7 + $0x90] sm:$0xff]  }
 0x309   :  { %1842 = vmatprep.subr.bf16.mxu1 %v2104_v22 }
 0x30a   :  { %v1999_v36 = vpop.eup %1998 }
 0x30b   :  { %v729_v39 = vmul.f32 %v1999_v36, %v1983_v60  ;;  %v470_v60 = vpop.f32.mrf.mxu1  ;;  %v1975_v36 = vld [vmem:[#allocation7 + $0x88] sm:$0xff]  }
 0x30c   :  { %v929_v40 = vpop.xlane.xlu0 %928  ;;  %v1236_v1 = vpack.c.bf16 %v470_v60, %v470_v60 }
 0x30d   :  { %2002 = vrcp.f32 %v929_v40  ;;  %v730_v41 = vpack.c.bf16 %v729_v39, %v729_v39 }
 0x30f   :  { %1833 = vmatmul.mubr.msk.bf16.vlgmr.msra.gmra.mxu1 %vm515_vm3, %v730_v41 }
 0x310   :  { %1843 = vmatpush3.bf16.msra.mxu1 %v837_v42  ;;  %1844 = vmatprep.mubr.msk.bf16.mxu1 %vm2105_vm1, %v2104_v22 }
 0x311   :  { %1854 = vmatprep.subr.bf16.mxu1 %v2104_v22 }
 0x312   :  { %v2001_v43 = vpop.eup %2000 }
 0x313   :  { %v830_v45 = vmul.f32 %v2001_v43, %v2195_v4  ;;  %v1241_v4 = vsel %vm532_vm2, %v1236_v1, 0 }
 0x314   :  { %v1030_v46 = vpop.xlane.xlu1 %1029 }
 0x315   :  { %2004 = vrcp.f32 %v1030_v46  ;;  %v831_v47 = vpack.c.bf16 %v830_v45, %v830_v45 }
 0x317   :  { %1845 = vmatmul.mubr.msk.bf16.vlgmr.msra.gmra.mxu1 %vm515_vm3, %v831_v47 }
 0x318   :  { %1855 = vmatpush3.bf16.msra.mxu1 %v938_v48  ;;  %1856 = vmatprep.mubr.msk.bf16.mxu1 %vm2105_vm1, %v2104_v22 }
 0x319   :  { %1866 = vmatprep.subr.bf16.mxu1 %v2104_v22 }
 0x31a   :  { %v2003_v49 = vpop.eup %2002 }
 0x31b   :  { %v931_v63 = vmul.f32 %v2003_v49, %v2199_v9  ;;  %v1947_v9 = vld [vmem:[#allocation7 + $0x38] sm:$0xff]  }
 0x31c   :  { %v1131_v51 = vpop.xlane.xlu0 %1130  ;;  %1757 = vmatpush3.bf16.msra.mxu0 %v1947_v9 }
 0x31d   :  { %2006 = vrcp.f32 %v1131_v51  ;;  %v932_v52 = vpack.c.bf16 %v931_v63, %v931_v63  ;;  %1758 = vmatprep.subr.bf16.mxu0 %v1948_v10 }
 0x31f   :  { %1857 = vmatmul.mubr.msk.bf16.vlgmr.msra.gmra.mxu1 %vm515_vm3, %v932_v52 }
 0x320   :  { %1867 = vmatpush3.bf16.msra.mxu1 %v1039_v53  ;;  %1868 = vmatprep.mubr.msk.bf16.mxu1 %vm2105_vm1, %v2104_v22 }
 0x321   :  { %1878 = vmatprep.subr.bf16.mxu1 %v2104_v22  ;;  %1759 = vmatpush3.bf16.msra.mxu0 %v1949_v11 }
 0x322   :  { %v2005_v54 = vpop.eup %2004  ;;  %1760 = vmatprep.subr.bf16.mxu0 %v1950_v12 }
 0x323   :  { %v1032_v0 = vmul.f32 %v2005_v54, %v2203_v14  ;;  %v1952_v14 = vld [vmem:[#allocation7 + $0x60] sm:$0xff]  }
 0x324   :  { %v1232_v57 = vpop.xlane.xlu1 %1231 }
 0x325   :  { %2008 = vrcp.f32 %v1232_v57  ;;  %v1033_v58 = vpack.c.bf16 %v1032_v0, %v1032_v0  ;;  %1761 = vmatpush3.bf16.msra.mxu0 %v1951_v13 }
 0x326   :  { %1762 = vmatprep.subr.bf16.mxu0 %v1952_v14 }
 0x327   :  { %1869 = vmatmul.mubr.msk.bf16.vlgmr.msra.gmra.mxu1 %vm515_vm3, %v1033_v58 }
 0x328   :  { %1879 = vmatpush3.bf16.msra.mxu1 %v1140_v59  ;;  %1880 = vmatprep.mubr.msk.bf16.mxu1 %vm2105_vm1, %v2104_v22 }
 0x329   :  { %1890 = vmatprep.subr.bf16.mxu1 %v2104_v22 }
 0x32a   :  { %v2007_v61 = vpop.eup %2006 }
 0x32b   :  { %v1133_v2 = vmul.f32 %v2007_v61, %v2207_v17  ;;  %v1956_v17 = vld [vmem:[#allocation7 + $0x18] sm:$0xff]  }
 0x32d   :  { %v1134_v3 = vpack.c.bf16 %v1133_v2, %v1133_v2 }
 0x32f   :  { %1881 = vmatmul.mubr.msk.bf16.vlgmr.msra.gmra.mxu1 %vm515_vm3, %v1134_v3 }
 0x330   :  { %1891 = vmatpush3.bf16.msra.mxu1 %v1241_v4  ;;  %1892 = vmatprep.mubr.msk.bf16.mxu1 %vm2105_vm1, %v2104_v22  ;;  %v1953_v22 = vld [vmem:[#allocation7 + $0x20] sm:$0xff]  }
 0x331   :  { %1763 = vmatpush3.bf16.msra.mxu0 %v1953_v22  ;;  %1778 = vmatprep.subr.bf16.mxu1 %v1955_v16 }
 0x332   :  { %v2009_v5 = vpop.eup %2008  ;;  %1764 = vmatprep.subr.bf16.mxu0 %v1954_v15  ;;  %v1691_v15 = vld [vmem:[%s2270_s3] ss:$0 sm:$0xff] }
 0x333   :  { %v1234_v6 = vmul.f32 %v2009_v5, %v2211_v19  ;;  %v1958_v19 = vld [vmem:[#allocation7 + $0x50] sm:$0xff]  }
 0x335   :  { %v1235_v7 = vpack.c.bf16 %v1234_v6, %v1234_v6  ;;  %1765 = vmatpush3.bf16.msra.mxu0 %v1956_v17 }
 0x336   :  { %1766 = vmatprep.subr.bf16.mxu0 %v1958_v19 }
 0x337   :  { %1893 = vmatmul.mubr.msk.bf16.vlgmr.msra.gmra.mxu1 %vm515_vm3, %v1235_v7 }
 0x338   :  { %1779 = vmatpush3.bf16.msra.mxu1 %v1957_v18 }
 0x339   :  { %1780 = vmatprep.subr.bf16.mxu1 %v1959_v20  ;;  %1767 = vmatpush3.bf16.msra.mxu0 %v1960_v21 }
 0x33a   :  { %1768 = vmatprep.subr.bf16.mxu0 %v1962_v24 }
 0x33c   :  { %1781 = vmatpush3.bf16.msra.mxu1 %v1961_v23 }
 0x33d   :  { %1782 = vmatprep.subr.bf16.mxu1 %v1963_v25  ;;  %1769 = vmatpush3.bf16.msra.mxu0 %v1964_v26 }
 0x33e   :  { %1770 = vmatprep.subr.bf16.mxu0 %v1966_v28 }
 0x340   :  { %1783 = vmatpush3.bf16.msra.mxu1 %v1965_v27 }
 0x341   :  { %1784 = vmatprep.subr.bf16.mxu1 %v1967_v29  ;;  %1771 = vmatpush3.bf16.msra.mxu0 %v1968_v30 }
 0x344   :  { %1785 = vmatpush3.bf16.msra.mxu1 %v1969_v31 }
 0x345   :  { %1786 = vmatprep.subr.bf16.mxu1 %v1970_v32 }
 0x348   :  { %1787 = vmatpush3.bf16.msra.mxu1 %v1971_v33 }
 0x349   :  { %1788 = vmatprep.subr.bf16.mxu1 %v1972_v34 }
 0x34c   :  { %1789 = vmatpush3.bf16.msra.mxu1 %v1973_v62 }
 0x34d   :  { %1790 = vmatprep.subr.bf16.mxu1 %v1974_v35 }
 0x350   :  { %1791 = vmatpush3.bf16.msra.mxu1 %v1975_v36 }
 0x351   :  { %1792 = vmatprep.subr.bf16.mxu1 %v1976_v37 }
 0x354   :  { %1793 = vmatpush3.bf16.msra.mxu1 %v1977_v38 }
 0x3bf   :  { %v570_v39 = vpop.f32.mrf.mxu1 }
 0x3c1   :  { %v1810_v40 = vpop.f32.mrf.mxu1 }
 0x3c3   :  { %v573_v41 = vpop.f32.mrf.mxu1 }
 0x3c5   :  { %v1811_v42 = vpop.f32.mrf.mxu1 }
 0x3c7   :  { %v671_v43 = vpop.f32.mrf.mxu1 }
 0x3c9   :  { %v1822_v44 = vpop.f32.mrf.mxu1 }
 0x3cb   :  { %v674_v45 = vpop.f32.mrf.mxu1 }
 0x3cd   :  { %v1823_v46 = vpop.f32.mrf.mxu1 }
 0x3cf   :  { %v772_v47 = vpop.f32.mrf.mxu1 }
 0x3d1   :  { %v1834_v48 = vpop.f32.mrf.mxu1 }
 0x3d3   :  { %v775_v49 = vpop.f32.mrf.mxu1 }
 0x3d5   :  { %v1835_v50 = vpop.f32.mrf.mxu1 }
 0x3d7   :  { %v873_v63 = vpop.f32.mrf.mxu1 }
 0x3d9   :  { %v1846_v51 = vpop.f32.mrf.mxu1 }
 0x3db   :  { %v876_v52 = vpop.f32.mrf.mxu1 }
 0x3dd   :  { %v1847_v53 = vpop.f32.mrf.mxu1 }
 0x3df   :  { %v974_v54 = vpop.f32.mrf.mxu1 }
 0x3e0   :  { %v1283_v59 = vpack.c.bf16 %v974_v54, %v570_v39 }
 0x3e1   :  { %v1858_v55 = vpop.f32.mrf.mxu1 }
 0x3e3   :  { %v977_v56 = vpop.f32.mrf.mxu1 }
 0x3e5   :  { %v1859_v0 = vpop.f32.mrf.mxu1 }
 0x3e7   :  { %v1075_v57 = vpop.f32.mrf.mxu1 }
 0x3e8   :  { %v1284_v58 = vpack.c.bf16 %v1075_v57, %v671_v43 }
 0x3e9   :  { %v1870_v60 = vpop.f32.mrf.mxu1 }
 0x3ea   :  { %1582 = vmatprep.mubr.bf16.mxu0 %v1284_v58 }
 0x3eb   :  { %v1078_v61 = vpop.f32.mrf.mxu1  ;;  %1583 = vmatmul.mubr.bf16.vlgmr.msra.gmra.mxu0 %v1283_v59 }
 0x3ed   :  { %v1871_v1 = vpop.f32.mrf.mxu1 }
 0x3ef   :  { %v1176_v2 = vpop.f32.mrf.mxu1 }
 0x3f0   :  { %v1285_v8 = vpack.c.bf16 %v1176_v2, %v772_v47 }
 0x3f1   :  { %v1882_v3 = vpop.f32.mrf.mxu1 }
 0x3f3   :  { %v1179_v4 = vpop.f32.mrf.mxu1 }
 0x3f5   :  { %v1883_v5 = vpop.f32.mrf.mxu1 }
 0x3f7   :  { %v1277_v6 = vpop.f32.mrf.mxu1 }
 0x3f8   :  { %v1286_v7 = vpack.c.bf16 %v1277_v6, %v873_v63 }
 0x3f9   :  { %v1894_v9 = vpop.f32.mrf.mxu1 }
 0x3fa   :  { %1623 = vmatprep.mubr.bf16.mxu1 %v1286_v7 }
 0x3fb   :  { %v1280_v10 = vpop.f32.mrf.mxu1  ;;  %1624 = vmatmul.mubr.bf16.vlgmr.msra.gmra.mxu1 %v1285_v8 }
 0x3fd   :  { %v1895_v11 = vpop.f32.mrf.mxu1 }
 0x4ab   :  { %v1772_v12 = vpop.f32.mrf.mxu0 }
 0x4ad   :  { %v1773_v13 = vpop.f32.mrf.mxu0 }
 0x4ae   :  { %v1774_v22 = vadd.f32 %v1773_v13, %v1772_v12 }
 0x4af   :  { %v1775_v14 = vpop.f32.mrf.mxu0 }
 0x4b0   :  { %v1585_v19 = vadd.f32 %v1774_v22, %v1691_v15 }
 0x4b1   :  { %v1776_v16 = vpop.f32.mrf.mxu0 }
 0x4b2   :  { %v1777_v20 = vadd.f32 %v1776_v16, %v1775_v14 }
 0x4b4   :  { %v1588_v26 = vadd.f32 %v1777_v20, %v1691_v15 }
 0x4bb   :  { %v1794_v17 = vpop.f32.mrf.mxu1 }
 0x4bd   :  { %v1795_v18 = vpop.f32.mrf.mxu1 }
 0x4be   :  { %v1796_v21 = vadd.f32 %v1795_v18, %v1794_v17 }
 0x4bf   :  { %v1797_v23 = vpop.f32.mrf.mxu1 }
 0x4c0   :  { %v1626_v24 = vadd.f32 %v1796_v21, %v1585_v19 }
 0x4c1   :  { %v1798_v25 = vpop.f32.mrf.mxu1 }
 0x4c2   :  { %1632 = vst [vmem:[#allocation8] sm:$0xff] %v1626_v24  ;;  %v1799_v27 = vadd.f32 %v1798_v25, %v1797_v23 }
 0x4c4   :  { %v1629_v28 = vadd.f32 %v1799_v27, %v1588_v26 }
 0x4c6   :  { %1633 = vst [vmem:[#allocation8 + $0x8] sm:$0xff] %v1629_v28 }
 0x4c7   :  { %2081 = shalt.err (!%p2078_p5)
}
 0x4c8   :  { %s2107_s3 = smov 128   ;;  %s2108_s10 = smov 8  }
 0x4c9   :  { %1645 = dma.vmem_to_hbm [thread:$0]  %s1640_s8, 256, %s2271_s4, [#allocation4], %s2107_s3, %s2107_s3, %s2108_s10  }
 0x4ca   :  { %2094 = dma.done.wait [#allocation4], 256  }
 0x4cb   :  { %2095 = vsyncadd [#allocation4], 4294967040 }
 0x4cc   :  { %1649 = vsyncpa [#allocation3], 1 }
 0x4cd   :  { %1650 = vsyncpa [#allocation6], 1 }
 0x4ce   :  { %1651 = vsyncpa [#allocation4], 1 }

</bundles_post_ra>
